<compile_context>
chip_gen: v6e
topology: v6e:2x2x1
jax: 0.10.0
libtpu: 0.0.40
codegen_flags: <defaults>
</compile_context>

<pallas_src>
import functools

import jax
import jax.numpy as jnp
from jax import lax
from jax.experimental import pallas as pl
from jax.experimental.pallas import tpu as pltpu


_PAIRS = 64            # (x0, x1) sample pairs per 128-lane row
_LANES = 2 * _PAIRS    # 128


def _wce_num_kernel(e_ref, x_ref, t_ref, out_ref, acc_ref, *,
                    tiles_per_core, num_tiles, rows_valid, block_rows,
                    needs_mask, has_dummy, bonafide_coef, spoof_coef):
    c = pl.program_id(0)            # core (leading "parallel" axis)
    i = pl.program_id(1)            # tile within this core ("arbitrary" axis)
    g = c * tiles_per_core + i      # global tile index

    @pl.when(i == 0)
    def _init():
        acc_ref[...] = jnp.zeros_like(acc_ref)

    def accumulate(mask_tail):
        x = x_ref[...].astype(jnp.float32)         # (T, 128) interleaved pairs
        T = x.shape[0]

        # Per-lane (1,128) constants: a handful of vreg ops per step, negligible
        # vs. the (T,128) work.
        # TODO(synk): could be hoisted if Mosaic guaranteed loop-invariant hoisting.
        lane = lax.broadcasted_iota(jnp.int32, (1, _LANES), 1)
        lane_f = lane.astype(jnp.float32)
        par_odd = (lane % 2) == 1
        # Probe pltpu.roll's rotation convention so the single-roll partner
        # trick below never depends on it.
        probe = pltpu.roll(lane_f, 1, axis=1)
        is_a = jnp.logical_and(par_odd, probe == lane_f - 1.0)   # roll gives x[j-1]
        is_b = jnp.logical_and(jnp.logical_not(par_odd), probe == lane_f + 1.0)
        valid_lane = jnp.logical_or(is_a, is_b)    # exactly one lane per pair
        flip = jnp.where(is_a, 1.0, -1.0)          # diff -> s = x1 - x0 on valid lanes
        nflip = -flip

        if mask_tail:
            row = lax.broadcasted_iota(jnp.int32, (T, _LANES), 0)
            row_ok = (g * block_rows + row) < rows_valid
            x = jnp.where(row_ok, x, 0.0)          # keep stale-VMEM overhang finite

        # Single roll: s = x1 - x0 appears (up to the probed sign `flip`) at one
        # parity lane of every pair.
        diff = x - pltpu.roll(x, 1, axis=1)        # (T, 128)

        # Duplicate each per-pair target onto both lanes of its pair with a 0/1
        # matmul on the otherwise-idle MXU.  Exact: {0,1} (and any int8 garbage
        # in the masked overhang) are exact through the bf16 passes of an f32
        # MXU matmul, and each output has exactly one nonzero term.
        t128 = jnp.dot(t_ref[...].astype(jnp.float32), e_ref[...],
                       preferred_element_type=jnp.float32)       # (T, 128)
        is_bona = t128 == 0.0                      # target class 0 (bonafide)

        # nll = softplus((1-2t) * (x1-x0)) = -log softmax(x)[t]   (2-class)
        # TODO(synk): jnp.log1p would be marginally more accurate if it lowered;
        # log(1 + .) is guaranteed to lower and the argument is in [1, 2].
        arg = jnp.where(is_bona, flip, nflip) * diff
        nll = jnp.maximum(arg, 0.0) + jnp.log(1.0 + jnp.exp(-jnp.abs(arg)))

        w = jnp.where(is_bona, bonafide_coef, spoof_coef)
        wsel = jnp.where(valid_lane, w, 0.0)
        if mask_tail:
            wsel = jnp.where(row_ok, wsel, 0.0)

        acc_ref[...] += wsel * nll                 # elementwise only; reduce at end

    if needs_mask:
        # Ragged-tail masking only on the (single) partial last tile; any
        # clamped duplicate step (odd tile count over 2 cores) is skipped too.
        @pl.when(g == num_tiles - 1)
        def _tail():
            accumulate(True)

        @pl.when(g < num_tiles - 1)
        def _full():
            accumulate(False)
    elif has_dummy:
        @pl.when(g < num_tiles)
        def _full():
            accumulate(False)
    else:
        accumulate(False)

    @pl.when(i == tiles_per_core - 1)
    def _finalize():
        out_ref[0] = jnp.sum(acc_ref[...], keepdims=True)


def _weighted_nll_sum_fused(logits, targets, bonafide_coef, spoof_coef):
    """sum_i w_{t_i} * (-log softmax(logits_i)[t_i]) as a few fused XLA ops."""
    x = logits.astype(jnp.float32)
    s = x[:, 1] - x[:, 0]
    arg = jnp.where(targets == 0, s, -s)
    nll = jnp.maximum(arg, 0.0) + jnp.log1p(jnp.exp(-jnp.abs(arg)))
    w = jnp.where(targets == 0, bonafide_coef, spoof_coef).astype(jnp.float32)
    return jnp.sum(w * nll)


def weighted_ce_loss(logits, is_spoofed, spoof_coef=1.0, bonafide_coef=9.0,
                     tile_rows=4096, min_kernel_samples=2048):
    """Equivalent of WeightedCELossWrapper.forward(logits, is_spoofed)."""
    N, C = logits.shape
    assert C == 2, "module uses a 2-class weight vector [bonafide, spoof]"
    assert tile_rows % 32 == 0, "keep int8 sublane packing / f32 (8,128) tiles legal"
    spoof_coef = float(spoof_coef)
    bonafide_coef = float(bonafide_coef)

    tgt = is_spoofed.reshape(N)
    # Denominator of the weighted mean depends only on the targets.
    n_spoof = jnp.sum(tgt.astype(jnp.float32))
    den = bonafide_coef * (N - n_spoof) + spoof_coef * n_spoof

    # Small-N fast path: kernel launch / pipeline setup dominates below a few
    # thousand samples (the module's primary config is batch=8).
    if N < max(_PAIRS, min_kernel_samples):
        return _weighted_nll_sum_fused(logits, tgt, bonafide_coef, spoof_coef) / den

    # Kernel handles the multiple-of-64 prefix; the <=63-sample remainder is
    # folded in with fused jnp ops (no full-array pad/copy).
    n_main = (N // _PAIRS) * _PAIRS
    rows = n_main // _PAIRS
    logits_main = logits if n_main == N else logits[:n_main]
    tgt_main = tgt if n_main == N else tgt[:n_main]

    x2d = logits_main.reshape(rows, _LANES)           # free contiguous reshape
    t2d = tgt_main.astype(jnp.int8).reshape(rows, _PAIRS)

    if rows <= tile_rows:
        T, num_tiles = rows, 1                        # single full-extent block
    else:
        T, num_tiles = tile_rows, pl.cdiv(rows, tile_rows)
    needs_mask = (rows % T) != 0          # partial last tile reads stale VMEM
    n_cores = 2 if num_tiles >= 2 else 1  # v7x: split the reduce across both TCs
    tiles_per_core = pl.cdiv(num_tiles, n_cores)
    has_dummy = n_cores * tiles_per_core != num_tiles

    if has_dummy:
        def tile_map(c, i):               # duplicate step re-reads tile 0 (gated off)
            return ((c * tiles_per_core + i) % num_tiles, 0)
    else:
        def tile_map(c, i):
            return (c * tiles_per_core + i, 0)

    # Constant (64,128) 0/1 pair-expansion matrix: E[k, j] = (j // 2 == k).
    # Constant index map -> DMA'd into VMEM once, never rebuilt per step.
    expand = (jnp.arange(_LANES)[None, :] // 2
              == jnp.arange(_PAIRS)[:, None]).astype(jnp.float32)

    kernel = functools.partial(
        _wce_num_kernel,
        tiles_per_core=tiles_per_core, num_tiles=num_tiles, rows_valid=rows,
        block_rows=T, needs_mask=needs_mask, has_dummy=has_dummy,
        bonafide_coef=bonafide_coef, spoof_coef=spoof_coef)

    bytes_in = x2d.size * x2d.dtype.itemsize + t2d.size + expand.size * 4
    partial_num = pl.pallas_call(
        kernel,
        out_shape=jax.ShapeDtypeStruct((n_cores, 1, 1), jnp.float32),
        grid=(n_cores, tiles_per_core),
        in_specs=[
            pl.BlockSpec((_PAIRS, _LANES), lambda c, i: (0, 0)),   # expand (const)
            pl.BlockSpec((T, _LANES), tile_map),                   # logits pairs
            pl.BlockSpec((T, _PAIRS), tile_map),                   # int8 targets
        ],
        out_specs=pl.BlockSpec((1, 1, 1), lambda c, i: (c, 0, 0)),
        scratch_shapes=[pltpu.VMEM((T, _LANES), jnp.float32)],     # per-core acc
        compiler_params=pltpu.CompilerParams(
            dimension_semantics=("parallel", "arbitrary")),
        cost_estimate=pl.CostEstimate(
            flops=16 * rows * _LANES + 2 * rows * _PAIRS * _LANES,
            transcendentals=2 * rows * _LANES,
            bytes_accessed=int(bytes_in) + 4 * n_cores),
    )(expand, x2d, t2d)

    num = jnp.sum(partial_num)
    if n_main < N:
        num = num + _weighted_nll_sum_fused(logits[n_main:], tgt[n_main:],
                                            bonafide_coef, spoof_coef)
    return num / den


def _reference(logits, is_spoofed, spoof_coef=1.0, bonafide_coef=9.0):
    # pure-JAX reference mirroring torch.nn.CrossEntropyLoss(weight=[bonafide, spoof])
    w = jnp.array([bonafide_coef, spoof_coef], dtype=jnp.float32)
    logp = jax.nn.log_softmax(logits.astype(jnp.float32), axis=-1)
    idx = is_spoofed.astype(jnp.int32)[:, None]
    nll = -jnp.take_along_axis(logp, idx, axis=-1)[:, 0]
    wi = w[idx[:, 0]]
    return jnp.sum(wi * nll) / jnp.sum(wi)


if __name__ == "__main__":
    key = jax.random.PRNGKey(0)
    ks = jax.random.split(key, 10)

    def check(got, want, tol=1e-4):
        assert jnp.allclose(got, want, rtol=tol, atol=tol), (got, want)

    # 1) Primary module config: batch=8 -> small-N fused fast path.
    N = 8
    logits = jax.random.normal(ks[0], (N, 2), dtype=jnp.float32)
    tgt = jax.random.randint(ks[1], (N,), 0, 2, dtype=jnp.int32)
    loss = weighted_ce_loss(logits, tgt)
    jax.block_until_ready(loss)
    check(loss, _reference(logits, tgt))

    # 2) Kernel path: single tile, single core (N multiple of 64).
    N = 512
    logits = 2.0 * jax.random.normal(ks[2], (N, 2), dtype=jnp.float32)
    tgt = jax.random.randint(ks[3], (N,), 0, 2, dtype=jnp.int32)
    loss = weighted_ce_loss(logits, tgt, min_kernel_samples=0)
    jax.block_until_ready(loss)
    check(loss, _reference(logits, tgt))

    # 3) Kernel path: 2-core grid + masked partial last tile + jnp tail (N%64!=0).
    N = 64 * 37 + 5
    logits = 3.0 * jax.random.normal(ks[4], (N, 2), dtype=jnp.float32)
    tgt = jax.random.randint(ks[5], (N,), 0, 2, dtype=jnp.int32)
    loss = weighted_ce_loss(logits, tgt, tile_rows=32, min_kernel_samples=0)
    jax.block_until_ready(loss)
    check(loss, _reference(logits, tgt))

    # 4) Kernel path: odd tile count -> skipped duplicate step on core 1; bf16 logits.
    N = 64 * 65
    logits = (2.0 * jax.random.normal(ks[6], (N, 2), dtype=jnp.float32)
              ).astype(jnp.bfloat16)
    tgt = jax.random.randint(ks[7], (N,), 0, 2, dtype=jnp.int32)
    loss = weighted_ce_loss(logits, tgt, tile_rows=32, min_kernel_samples=0)
    jax.block_until_ready(loss)
    check(loss, _reference(logits, tgt))

    # 5) Default settings at a size that takes the kernel path.
    N = 4096
    logits = jax.random.normal(ks[8], (N, 2), dtype=jnp.float32)
    tgt = jax.random.randint(ks[9], (N,), 0, 2, dtype=jnp.int32)
    loss = weighted_ce_loss(logits, tgt)
    jax.block_until_ready(loss)
    check(loss, _reference(logits, tgt))

    print("KERNEL_OK")
</pallas_src>

<mosaic_0001>
module attributes {stable_mosaic.version = 11 : i64} {
  func.func @_wce_num_kernel(%arg0: i32, %arg1: i32, %arg2: memref<64x128xf32, #tpu.memory_space<vmem>>, %arg3: memref<8x128xf32, #tpu.memory_space<vmem>>, %arg4: memref<8x64xi8, #tpu.memory_space<vmem>>, %arg5: memref<1x1x1xf32, #tpu.memory_space<vmem>>, %arg6: memref<8x128xf32, #tpu.memory_space<vmem>>) attributes {dimension_semantics = [#tpu.dimension_semantics<parallel>, #tpu.dimension_semantics<arbitrary>], iteration_bounds = array<i64: 1, 1>, scalar_prefetch = 0 : i64, scratch_operands = 1 : i64, tpu.core_type = #tpu.core_type<tc>, window_params = [{pipeline_mode = #tpu.pipeline_mode<synchronous>, transform_indices = @transform_0, window_bounds = array<i64: 64, 128>}, {transform_indices = @transform_1, window_bounds = array<i64: 8, 128>}, {transform_indices = @transform_2, window_bounds = array<i64: 8, 64>}, {transform_indices = @transform_3, window_bounds = array<i64: 1, 1, 1>}]} {
    %c0_i32 = arith.constant 0 : i32
    %0 = arith.cmpi eq, %arg1, %c0_i32 : i32
    %1 = arith.extui %0 : i1 to i32
    %c0_i32_0 = arith.constant 0 : i32
    %2 = arith.cmpi ne, %1, %c0_i32_0 : i32
    scf.if %2 {
      %cst_32 = arith.constant 0.000000e+00 : f32
      %78 = vector.broadcast %cst_32 : f32 to vector<8x128xf32>
      %c0_33 = arith.constant 0 : index
      %c0_34 = arith.constant 0 : index
      %79 = vector.load %arg6[%c0_33, %c0_34] : memref<8x128xf32, #tpu.memory_space<vmem>>, vector<8x128xf32>
      tpu.vector_store %arg6[%c0_33, %c0_34], %78 {strides = array<i32>} : memref<8x128xf32, #tpu.memory_space<vmem>>, vector<8x128xf32>,
    } else {
    }
    %c0 = arith.constant 0 : index
    %c0_1 = arith.constant 0 : index
    %3 = vector.load %arg3[%c0, %c0_1] : memref<8x128xf32, #tpu.memory_space<vmem>>, vector<8x128xf32>
    %4 = tpu.iota {dimensions = array<i32: 1>} : vector<1x128xi32>
    %5 = arith.sitofp %4 : vector<1x128xi32> to vector<1x128xf32>
    %c2_i32 = arith.constant 2 : i32
    %c0_i32_2 = arith.constant 0 : i32
    %6 = arith.cmpi eq, %c2_i32, %c0_i32_2 : i32
    %c1_i32 = arith.constant 1 : i32
    %7 = arith.select %6, %c1_i32, %c2_i32 : i32
    %8 = vector.broadcast %7 : i32 to vector<1x128xi32>
    %9 = arith.remsi %4, %8 : vector<1x128xi32>
    %c0_i32_3 = arith.constant 0 : i32
    %10 = vector.broadcast %c0_i32_3 : i32 to vector<1x128xi32>
    %11 = arith.cmpi ne, %9, %10 : vector<1x128xi32>
    %c0_i32_4 = arith.constant 0 : i32
    %12 = vector.broadcast %c0_i32_4 : i32 to vector<1x128xi32>
    %13 = arith.cmpi slt, %9, %12 : vector<1x128xi32>
    %c0_i32_5 = arith.constant 0 : i32
    %14 = arith.cmpi slt, %7, %c0_i32_5 : i32
    %15 = vector.broadcast %14 : i1 to vector<1x128xi1>
    %16 = vector.broadcast %15 : vector<1x128xi1> to vector<1x128xi1>
    %17 = arith.xori %13, %16 : vector<1x128xi1>
    %18 = arith.andi %17, %11 : vector<1x128xi1>
    %19 = vector.broadcast %7 : i32 to vector<1x128xi32>
    %20 = arith.addi %9, %19 : vector<1x128xi32>
    %21 = arith.select %18, %20, %9 : vector<1x128xi1>, vector<1x128xi32>
    %c1_i32_6 = arith.constant 1 : i32
    %22 = vector.broadcast %c1_i32_6 : i32 to vector<1x128xi32>
    %23 = arith.cmpi eq, %21, %22 : vector<1x128xi32>
    %c1_i32_7 = arith.constant 1 : i32
    %24 = tpu.dynamic_rotate %5 by %c1_i32_7 dim 1 : vector<1x128xf32>, i32 -> vector<1x128xf32>
    %cst = arith.constant 1.000000e+00 : f32
    %25 = vector.broadcast %cst : f32 to vector<1x128xf32>
    %26 = arith.subf %5, %25 : vector<1x128xf32>
    %27 = arith.cmpf oeq, %24, %26 : vector<1x128xf32>
    %28 = arith.andi %23, %27 : vector<1x128xi1>
    %cst_8 = arith.constant dense<true> : vector<1x128xi1>
    %29 = arith.xori %23, %cst_8 : vector<1x128xi1>
    %cst_9 = arith.constant 1.000000e+00 : f32
    %30 = vector.broadcast %cst_9 : f32 to vector<1x128xf32>
    %31 = arith.addf %5, %30 : vector<1x128xf32>
    %32 = arith.cmpf oeq, %24, %31 : vector<1x128xf32>
    %33 = arith.andi %29, %32 : vector<1x128xi1>
    %34 = arith.ori %28, %33 : vector<1x128xi1>
    %cst_10 = arith.constant 1.000000e+00 : f32
    %cst_11 = arith.constant -1.000000e+00 : f32
    %35 = vector.broadcast %cst_10 : f32 to vector<1x128xf32>
    %36 = vector.broadcast %cst_11 : f32 to vector<1x128xf32>
    %37 = arith.select %28, %35, %36 : vector<1x128xi1>, vector<1x128xf32>
    %cst_12 = arith.constant 0.000000e+00 : f32
    %38 = vector.broadcast %cst_12 : f32 to vector<1x128xf32>
    %39 = arith.subf %38, %37 : vector<1x128xf32>
    %c1_i32_13 = arith.constant 1 : i32
    %40 = tpu.dynamic_rotate %3 by %c1_i32_13 dim 1 : vector<8x128xf32>, i32 -> vector<8x128xf32>
    %41 = arith.subf %3, %40 : vector<8x128xf32>
    %c0_14 = arith.constant 0 : index
    %c0_15 = arith.constant 0 : index
    %42 = vector.load %arg4[%c0_14, %c0_15] : memref<8x64xi8, #tpu.memory_space<vmem>>, vector<8x64xi8>
    %43 = arith.sitofp %42 : vector<8x64xi8> to vector<8x64xf32>
    %c0_16 = arith.constant 0 : index
    %c0_17 = arith.constant 0 : index
    %44 = vector.load %arg2[%c0_16, %c0_17] : memref<64x128xf32, #tpu.memory_space<vmem>>, vector<64x128xf32>
    %cst_18 = arith.constant dense<0.000000e+00> : vector<8x128xf32>
    %45 = tpu.matmul %43, %44, %cst_18 {dimension_numbers = #tpu.dot_dimension_numbers<[1], [0], [0], [1], [0, 0, 1, 1], [], []>} : vector<8x64xf32>, vector<64x128xf32>, vector<8x128xf32> -> vector<8x128xf32>
    %cst_19 = arith.constant 0.000000e+00 : f32
    %46 = vector.broadcast %cst_19 : f32 to vector<8x128xf32>
    %47 = arith.cmpf oeq, %45, %46 : vector<8x128xf32>
    %48 = vector.shape_cast %37 : vector<1x128xf32> to vector<1x128xf32>
    %49 = vector.broadcast %48 : vector<1x128xf32> to vector<8x128xf32>
    %50 = vector.shape_cast %39 : vector<1x128xf32> to vector<1x128xf32>
    %51 = vector.broadcast %50 : vector<1x128xf32> to vector<8x128xf32>
    %52 = arith.select %47, %49, %51 : vector<8x128xi1>, vector<8x128xf32>
    %53 = arith.mulf %52, %41 : vector<8x128xf32>
    %cst_20 = arith.constant 0.000000e+00 : f32
    %54 = vector.broadcast %cst_20 : f32 to vector<8x128xf32>
    %55 = arith.maximumf %53, %54 : vector<8x128xf32>
    %56 = math.absf %53 : vector<8x128xf32>
    %cst_21 = arith.constant 0.000000e+00 : f32
    %57 = vector.broadcast %cst_21 : f32 to vector<8x128xf32>
    %58 = arith.subf %57, %56 : vector<8x128xf32>
    %59 = math.exp %58 : vector<8x128xf32>
    %cst_22 = arith.constant 1.000000e+00 : f32
    %60 = vector.broadcast %cst_22 : f32 to vector<8x128xf32>
    %61 = arith.addf %60, %59 : vector<8x128xf32>
    %62 = math.log %61 : vector<8x128xf32>
    %63 = arith.addf %55, %62 : vector<8x128xf32>
    %cst_23 = arith.constant 9.000000e+00 : f32
    %cst_24 = arith.constant 1.000000e+00 : f32
    %64 = vector.broadcast %cst_23 : f32 to vector<8x128xf32>
    %65 = vector.broadcast %cst_24 : f32 to vector<8x128xf32>
    %66 = arith.select %47, %64, %65 : vector<8x128xi1>, vector<8x128xf32>
    %cst_25 = arith.constant 0.000000e+00 : f32
    %67 = vector.shape_cast %34 : vector<1x128xi1> to vector<1x128xi1>
    %68 = vector.broadcast %67 : vector<1x128xi1> to vector<8x128xi1>
    %69 = vector.broadcast %cst_25 : f32 to vector<8x128xf32>
    %70 = arith.select %68, %66, %69 : vector<8x128xi1>, vector<8x128xf32>
    %c0_26 = arith.constant 0 : index
    %c0_27 = arith.constant 0 : index
    %71 = vector.load %arg6[%c0_26, %c0_27] : memref<8x128xf32, #tpu.memory_space<vmem>>, vector<8x128xf32>
    %72 = arith.mulf %70, %63 : vector<8x128xf32>
    %73 = arith.addf %71, %72 : vector<8x128xf32>
    %c0_28 = arith.constant 0 : index
    %c0_29 = arith.constant 0 : index
    %74 = vector.load %arg6[%c0_28, %c0_29] : memref<8x128xf32, #tpu.memory_space<vmem>>, vector<8x128xf32>
    tpu.vector_store %arg6[%c0_28, %c0_29], %73 {strides = array<i32>} : memref<8x128xf32, #tpu.memory_space<vmem>>, vector<8x128xf32>,
    %c0_i32_30 = arith.constant 0 : i32
    %75 = arith.cmpi eq, %arg1, %c0_i32_30 : i32
    %76 = arith.extui %75 : i1 to i32
    %c0_i32_31 = arith.constant 0 : i32
    %77 = arith.cmpi ne, %76, %c0_i32_31 : i32
    scf.if %77 {
      %c0_32 = arith.constant 0 : index
      %c0_33 = arith.constant 0 : index
      %78 = vector.load %arg6[%c0_32, %c0_33] : memref<8x128xf32, #tpu.memory_space<vmem>>, vector<8x128xf32>
      %79 = vector.shape_cast %78 : vector<8x128xf32> to vector<1x8x128xf32>
      %cst_34 = arith.constant dense<0.000000e+00> : vector<1xf32>
      %80 = vector.multi_reduction <add>, %79, %cst_34 [1, 2] : vector<1x8x128xf32> to vector<1xf32>
      %81 = vector.shape_cast %80 : vector<1xf32> to vector<1x1x1xf32>
      %82 = vector.extract %81[0, 0, 0] : f32 from vector<1x1x1xf32>
      %83 = vector.broadcast %82 : f32 to vector<1x1xf32>
      %c0_35 = arith.constant 0 : index
      %c0_36 = arith.constant 0 : index
      %c0_37 = arith.constant 0 : index
      %84 = vector.load %arg5[%c0_35, %c0_36, %c0_37] : memref<1x1x1xf32, #tpu.memory_space<vmem>>, vector<1x1x1xf32>
      %85 = vector.shape_cast %84 : vector<1x1x1xf32> to vector<1x1xf32>
      %86 = vector.shape_cast %83 : vector<1x1xf32> to vector<1x1x1xf32>
      tpu.vector_store %arg5[%c0_35, %c0_36, %c0_37], %86 {strides = array<i32>} : memref<1x1x1xf32, #tpu.memory_space<vmem>>, vector<1x1x1xf32>,
    } else {
    }
    return
  }
  func.func @transform_0(%arg0: i32, %arg1: i32) -> (i32, i32) {
    %c0_i32 = arith.constant 0 : i32
    %c0_i32_0 = arith.constant 0 : i32
    %c0_i32_1 = arith.constant 0 : i32
    return %c0_i32, %c0_i32_0 : i32, i32
  }
  func.func @transform_1(%arg0: i32, %arg1: i32) -> (i32, i32) {
    %c1_i32 = arith.constant 1 : i32
    %0 = arith.muli %arg0, %c1_i32 : i32
    %1 = arith.addi %0, %arg1 : i32
    %c0_i32 = arith.constant 0 : i32
    %c0_i32_0 = arith.constant 0 : i32
    return %1, %c0_i32 : i32, i32
  }
  func.func @transform_2(%arg0: i32, %arg1: i32) -> (i32, i32) {
    %c1_i32 = arith.constant 1 : i32
    %0 = arith.muli %arg0, %c1_i32 : i32
    %1 = arith.addi %0, %arg1 : i32
    %c0_i32 = arith.constant 0 : i32
    %c0_i32_0 = arith.constant 0 : i32
    return %1, %c0_i32 : i32, i32
  }
  func.func @transform_3(%arg0: i32, %arg1: i32) -> (i32, i32, i32) {
    %c0_i32 = arith.constant 0 : i32
    %c0_i32_0 = arith.constant 0 : i32
    %c0_i32_1 = arith.constant 0 : i32
    return %arg0, %c0_i32, %c0_i32_0 : i32, i32, i32
  }
}

</mosaic_0001>

<bundles_post_ra>
// kernel: tpu_custom_call.1
= control target key start
LH: loop header
LB: loop body
LE: loop exit
PB: predicated region body
PF: predicated region fallthrough
CT: control target
= control target key end

     0   :  { %8 = vsyncpa [#allocation4], 0  ;;  %s412_s0 = inlined_call_operand.hbm [shape: f32[64,128], index: 0, kind: input, shape index: {}]   ;;  %s413_s1 = inlined_call_operand.hbm [shape: f32[8,128], index: 1, kind: input, shape index: {}]   ;;  %s414_s2 = inlined_call_operand.vmem [shape: s8[8,64], index: 2, kind: input, shape index: {}]   ;;  %s415_s3 = inlined_call_operand.hbm [shape: f32[1,1,1], index: 3, kind: output, shape index: {}]  }
   0x1   :  { %9 = vsyncpa [#allocation7], 0 }
   0x2   :  { %10 = vsyncpa [#allocation5], 0  ;;  %s368_s12 = smov [#allocation3]  }
   0x3   :  { %s16_s13 = sshll.u32 %s368_s12, 4  ;;  %s17_s13 = int_to_ptr.vmem [resolvable:$true] %s16_s13 }
   0x4   :  { %s310_s14 = scalar_lea.vmem %s17_s13, 1024  ;;  %p315_p1 = scmp.lt.s32.totalorder %s17_s13, %s17_s13 }
   0x5   :  { %p311_p0 = scmp.ne.s32.totalorder %s17_s13, %s310_s14  ;;  %p316_p2 = scmp.lt.s32.totalorder %s310_s14, %s310_s14 }
   0x7   :  { %p317_p3 = por %p316_p2, %p315_p1 }
   0x9   :  { %p318_p4 = pnand %p317_p3, %p311_p0 }
   0xb   :  { %321 = shalt.err (!%p318_p4)
}
   0xc   :  { %s369_s15 = smov 128   ;;  %s370_s16 = smov 8  }
   0xd   :  { %22 = dma.hbm_to_vmem [thread:$0]  %s412_s0, 1024, %s17_s13, [#allocation4], %s369_s15, %s369_s15, %s370_s16  }
   0xe   :  { %s371_s19 = smov [#allocation6]  }
   0xf   :  { %s32_s20 = sshll.u32 %s371_s19, 4  ;;  %s33_s20 = int_to_ptr.vmem [resolvable:$true] %s32_s20 }
  0x10   :  { %s330_s21 = scalar_lea.vmem %s33_s20, 128  ;;  %p335_p6 = scmp.lt.s32.totalorder %s33_s20, %s33_s20 }
  0x11   :  { %p331_p5 = scmp.ne.s32.totalorder %s33_s20, %s330_s21  ;;  %p336_p7 = scmp.lt.s32.totalorder %s330_s21, %s330_s21 }
  0x13   :  { %p337_p8 = por %p336_p7, %p335_p6 }
  0x15   :  { %p338_p9 = pnand %p337_p8, %p331_p5 }
  0x17   :  { %341 = shalt.err (!%p338_p9)
}
  0x18   :  { %35 = dma.hbm_to_vmem [thread:$0]  %s413_s1, 128, %s33_s20, [#allocation7]  }
  0x19   :  { %362 = dma.done.wait [#allocation4], 1024  }
  0x1a   :  { %363 = vsyncadd [#allocation4], 4294966272 }
  0x1b   :  { %364 = dma.done.wait [#allocation7], 128  }
  0x1c   :  { %365 = vsyncadd [#allocation7], 4294967168  ;;  %v68_v0 = vlaneseq  ;;  %v372_v1 = vmov 0.0   ;;  %vm373_vm0 = vmmov 0   ;;  %s374_s0 = smov 1   ;;  %v109_v4 = vld [vmem:[#allocation3 + $0x38] sm:$0xff] }
  0x1d   :  { %265 = vmatprep.subr.mxu0 %v372_v1  ;;  %281 = vmatprep.mubr.msk.f32.mxu0 %vm373_vm0, %v372_v1  ;;  %v108_v5 = vld [vmem:[#allocation3 + $0x30] sm:$0xff]  ;;  %v107_v6 = vld [vmem:[#allocation3 + $0x28] sm:$0xff]  ;;  %v67_v7 = vld [vmem:[#allocation6] sm:$0xff]  ;;  %vm110_vm1 = vcmask 523264   ;;  %vm375_vm3 = vmmov 1   ;;  %v376_v22 = vmov -1.0  }
  0x1e   :  { %v69_v2 = vand.u32 127, %v68_v0  ;;  %266 = vmatpush3.msra.mxu0 %v109_v4  ;;  %v106_v8 = vld [vmem:[#allocation3 + $0x20] sm:$0xff]  ;;  %v105_v10 = vld [vmem:[#allocation3 + $0x18] sm:$0xff]  ;;  %v104_v11 = vld [vmem:[#allocation3 + $0x10] sm:$0xff]  ;;  %v186_v17 = vshrl.u32 %v68_v0, 7  ;;  %v377_v26 = vmov 0  }
  0x1f   :  { %267 = vmatprep.subr.mxu0 %v372_v1  ;;  %v99_v9 = vld [vmem:[%s414_s2] sm:$0x3]  ;;  %v103_v13 = vld [vmem:[#allocation3 + $0x8] sm:$0xff]  ;;  %v378_v42 = vmov 1.0   ;;  %s379_s2 = smov [#allocation8]   ;;  %vm230_vm12 = vcmask 0  }
  0x20   :  { %v70_v3 = vcvt.s32.f32 %v69_v2  ;;  %268 = vmatpush3.msra.mxu0 %v108_v5  ;;  %v100_v12 = vunpack.c.0.s8 %v99_v9  ;;  %v102_v14 = vld [vmem:[#allocation3] sm:$0xff]  ;;  %v75_v16 = vand.u32 1, %v69_v2  ;;  %v187_v20 = vsub.s32 0, %v186_v17  ;;  %s238_s25 = sshll.u32 %s379_s2, 4  ;;  %s239_s25 = int_to_ptr.vmem [resolvable:$true] %s238_s25 }
  0x21   :  { %269 = vmatprep.subr.mxu0 %v372_v1  ;;  %s342_s27 = scalar_lea.vmem %s239_s25, 16  ;;  %s346_s28 = scalar_lea.vmem %s239_s25, 32 }
  0x22   :  { %84 = vrot.lane.b32.xlu0 %v70_v3, %s374_s0  ;;  %270 = vmatpush3.msra.mxu0 %v107_v6  ;;  %v101_v15 = vcvt.s32.f32 %v100_v12  ;;  %vm83_vm2 = vcmp.eq.s32.totalorder %v75_v16, 1  ;;  %v254_v18 = vadd.f32 -1.0, %v70_v3  ;;  %v90_v19 = vadd.f32 1.0, %v70_v3  ;;  %p343_p10 = scmp.ne.s32.totalorder %s239_s25, %s342_s27  ;;  %p347_p11 = scmp.lt.s32.totalorder %s239_s25, %s239_s25 }
  0x23   :  { %271 = vmatprep.subr.mxu0 %v372_v1  ;;  %vm89_vm4 = vmxor %vm83_vm2, %vm375_vm3  ;;  %p348_p12 = scmp.lt.s32.totalorder %s346_s28, %s342_s27 }
  0x24   :  { %272 = vmatpush3.msra.mxu0 %v106_v8 }
  0x25   :  { %273 = vmatprep.subr.mxu0 %v372_v1  ;;  %p349_p13 = por %p348_p12, %p347_p11 }
  0x26   :  { %96 = vrot.lane.b32.xlu0 %v67_v7, %s374_s0  ;;  %274 = vmatpush3.msra.mxu0 %v105_v10 }
  0x27   :  { %275 = vmatprep.subr.mxu0 %v372_v1  ;;  %p350_p0 = pnand %p349_p13, %p343_p10 }
  0x28   :  { %276 = vmatpush3.msra.mxu0 %v104_v11 }
  0x29   :  { %277 = vmatprep.subr.mxu0 %v372_v1 }
  0x2a   :  { %278 = vmatpush3.msra.mxu0 %v103_v13 }
  0x2b   :  { %279 = vmatprep.subr.mxu0 %v372_v1 }
  0x2c   :  { %280 = vmatpush3.msra.mxu0 %v102_v14 }
  0x2d   :  { %282 = vmatmul.mubr.msk.f32.vlgmr.msra.gmra.mxu0 %vm110_vm1, %v101_v15 }
  0x94   :  { %v85_v21 = vpop.permute.xlu0 %84 }
  0x95   :  { %vm87_vm5 = vcmp.eq.f32.partialorder %v85_v21, %v254_v18  ;;  %vm91_vm6 = vcmp.eq.f32.partialorder %v85_v21, %v90_v19 }
  0x96   :  { %vm88_vm7 = vmand %vm83_vm2, %vm87_vm5 }
  0x97   :  { %vm92_vm8 = vmand %vm89_vm4, %vm91_vm6  ;;  %v94_v23 = vsel %vm88_vm7, 1.0, %v376_v22 }
  0x98   :  { %vm93_vm9 = vmor %vm88_vm7, %vm92_vm8  ;;  %v95_v24 = vsub.f32 0.0, %v94_v23  ;;  %v188_v25 = vrot.slane %v94_v23, %v187_v20  ;;  %v97_v30 = vpop.permute.xlu0 %96 }
  0x99   :  { %v205_v27 = vsel %vm93_vm9, 1, %v377_v26  ;;  %v98_v31 = vsub.f32 %v67_v7, %v97_v30 }
  0x9a   :  { %v192_v28 = vrot.slane %v95_v24, %v187_v20  ;;  %v209_v29 = vrot.slane %v205_v27, %v187_v20 }
  0x9c   :  { %vm210_vm11 = vcmp.eq.s32.totalorder %v209_v29, 1 }
  0xed   :  { %v180_v32 = vpop.f32.mrf.mxu0 }
  0xee   :  { %vm184_vm10 = vcmp.eq.f32.partialorder %v180_v32, 0.0 }
  0xef   :  { %v193_v33 = vsel %vm184_vm10, %v188_v25, %v192_v28  ;;  %v283_v34 = vpop.f32.mrf.mxu0  ;;  %v204_v43 = vsel %vm184_vm10, 9.0, %v378_v42 }
  0xf0   :  { %v194_v35 = vmul.f32 %v193_v33, %v98_v31  ;;  %v211_v47 = vsel %vm210_vm11, %v204_v43, 0.0 }
  0xf2   :  { %v196_v36 = vand.u32 2147483647, %v194_v35  ;;  %v195_v44 = vmax.f32 %v194_v35, 0.0 }
  0xf4   :  { %v197_v37 = vsub.f32 0.0, %v196_v36 }
  0xf6   :  { %v198_v38 = vmul.f32 1.442695, %v197_v37 }
  0xf8   :  { %298 = vpow2.f32 %v198_v38 }
 0x105   :  { %v299_v39 = vpop.eup %298 }
 0x106   :  { %v200_v40 = vadd.f32 1.0, %v299_v39 }
 0x108   :  { %300 = vlog2.f32 %v200_v40 }
 0x115   :  { %v301_v41 = vpop.eup %300 }
 0x116   :  { %v202_v45 = vmul.f32 0.6931472, %v301_v41 }
 0x118   :  { %v203_v46 = vadd.f32 %v202_v45, %v195_v44 }
 0x11a   :  { %v213_v48 = vmul.f32 %v211_v47, %v203_v46 }
 0x11c   :  { %220 = vadd.xlane.f32.xlu1 %v213_v48 }
 0x1a5   :  { %v221_v49 = vpop.xlane.xlu1 %220 }
 0x1a6   :  { %v222_v50 = vrot.slane %v221_v49, 4 }
 0x1a8   :  { %v223_v51 = vadd.f32 %v222_v50, %v221_v49 }
 0x1aa   :  { %v224_v52 = vrot.slane %v223_v51, 2 }
 0x1ac   :  { %v225_v53 = vadd.f32 %v224_v52, %v223_v51 }
 0x1ae   :  { %v226_v54 = vrot.slane %v225_v53, 1 }
 0x1b0   :  { %v227_v55 = vadd.f32 %v226_v54, %v225_v53 }
 0x1b2   :  { %284 = vpush %v227_v55 }
 0x1e3   :  { %s285_s26 = spop %284 }
 0x1e4   :  { %v229_v56 = vstv %s285_s26 }
 0x1e5   :  { %231 = vst.msk [vmem:[#allocation8] sm:$0x1] %vm230_vm12, %v229_v56 }
 0x1e6   :  { %353 = shalt.err (!%p350_p0)
}
 0x1e7   :  { %241 = dma.vmem_to_hbm [thread:$0]  %s239_s25, 16, %s415_s3, [#allocation5]  }
 0x1e8   :  { %366 = dma.done.wait [#allocation5], 16  }
 0x1e9   :  { %367 = vsyncadd [#allocation5], 4294967280 }
 0x1ea   :  { %245 = vsyncpa [#allocation4], 1 }
 0x1eb   :  { %246 = vsyncpa [#allocation7], 1 }
 0x1ec   :  { %247 = vsyncpa [#allocation5], 1 }

</bundles_post_ra>
